<compile_context>
chip_gen: v7x
topology: tpu7x:2x2x1
jax: 0.10.0
libtpu: 0.0.40
codegen_flags: <defaults>
</compile_context>

<pallas_src>
import jax
import jax.numpy as jnp
from jax.experimental import pallas as pl
from jax.experimental.pallas import tpu as pltpu


def probhead_kernel(x_ref, w_ref, b_ref, o_ref, acc_ref):
    # x_ref:   (TB, C, THW)  input tile (spatial axis tiled, lane-dense)
    # w_ref:   (1, C)        Linear weight pre-scaled by 1/(H*W)
    # b_ref:   (1,)          bias scalar in SMEM
    # o_ref:   (TB, 1)       sigmoid(mean_pool(x) @ w.T + b)
    # acc_ref: (TB, C)       f32 partial-sum accumulator (lane-dense)
    k = pl.program_id(1)

    @pl.when(k == 0)
    def _init():
        acc_ref[...] = jnp.zeros_like(acc_ref)

    # Partial spatial sum for this tile (reduce over the lane axis).
    acc_ref[...] += jnp.sum(x_ref[...].astype(jnp.float32), axis=-1)

    @pl.when(k == pl.num_programs(1) - 1)
    def _finalize():
        # acc holds sum_hw x[b, c, :]; weight is pre-scaled by 1/(H*W), so this
        # is exactly mean-pool -> Linear -> sigmoid.
        logits = jnp.sum(acc_ref[...] * w_ref[...].astype(jnp.float32),
                         axis=-1, keepdims=True)              # (TB, 1)
        logits = logits + b_ref[0]
        o_ref[...] = jax.nn.sigmoid(logits).astype(o_ref.dtype)


def _pick_tiles(B, C, HW, itemsize, max_block_bytes):
    """Choose (batch tile, spatial tile) satisfying the (8, 128) layout rules."""
    # Batch tile: multiple of 8 (sublane rule for the (TB, 1) output block)
    # unless the full batch is taken.
    tb = 8 if (B % 8 == 0) else B
    # Spatial tile: largest multiple of 128 dividing HW that keeps one x block
    # under max_block_bytes (Pallas double-buffers it); else full HW extent.
    if HW % 128 != 0:
        return tb, HW
    row_bytes = tb * C * itemsize
    thw = 128
    t = 128
    while t <= HW:
        if HW % t == 0 and row_bytes * t <= max_block_bytes:
            thw = t
        t += 128
    return tb, thw


def prob_head(x_nchw, weight, bias, *, max_block_bytes=4 * 1024 * 1024):
    """x_nchw: (B, C, H, W). weight: (1, C) (PyTorch Linear layout). bias: (1,)."""
    B, C, H, W = x_nchw.shape
    HW = H * W
    x_flat = x_nchw.reshape(B, C, HW)

    # Fold the 1/(H*W) mean scale into the weight; keep it lane-dense (1, C).
    w_scaled = weight.reshape(1, C).astype(jnp.float32) / jnp.float32(HW)
    b_arr = bias.reshape(1).astype(jnp.float32)

    tb, thw = _pick_tiles(B, C, HW, x_flat.dtype.itemsize, max_block_bytes)
    grid = (B // tb, HW // thw)

    cost = pl.CostEstimate(
        flops=2 * B * C * HW,
        transcendentals=B,
        bytes_accessed=x_flat.size * x_flat.dtype.itemsize + 4 * C + 4 * B,
    )

    out = pl.pallas_call(
        probhead_kernel,
        out_shape=jax.ShapeDtypeStruct((B, 1), x_nchw.dtype),
        grid_spec=pltpu.PrefetchScalarGridSpec(
            num_scalar_prefetch=0,
            grid=grid,
            in_specs=[
                # (TB, C, THW): batch-tiled, full C, spatial reduction tiled.
                pl.BlockSpec((tb, C, thw), lambda i, k: (i, 0, k)),
                # Weight: constant block index -> resident in VMEM.
                pl.BlockSpec((1, C), lambda i, k: (0, 0)),
                # Bias scalar in SMEM (no per-step VMEM DMA).
                pl.BlockSpec(memory_space=pltpu.MemorySpace.SMEM),
            ],
            out_specs=pl.BlockSpec((tb, 1), lambda i, k: (i, 0)),
            scratch_shapes=[pltpu.VMEM((tb, C), jnp.float32)],
        ),
        compiler_params=pltpu.CompilerParams(
            dimension_semantics=("parallel", "arbitrary"),
            vmem_limit_bytes=32 * 1024 * 1024,
        ),
        cost_estimate=cost,
    )(x_flat, w_scaled, b_arr)
    return out


if __name__ == "__main__":
    # Small shapes consistent with the module's forward: (B, C, H, W)
    B, C, H, W = 2, 4, 16, 16
    key = jax.random.PRNGKey(0)
    kx, kw, kb = jax.random.split(key, 3)

    x = jax.random.normal(kx, (B, C, H, W), dtype=jnp.float32)

    # Deterministic param init mimicking nn.Linear defaults: U(-1/sqrt(C), 1/sqrt(C))
    bound = 1.0 / jnp.sqrt(jnp.float32(C))
    weight = jax.random.uniform(kw, (1, C), minval=-bound, maxval=bound,
                                dtype=jnp.float32)
    bias = jax.random.uniform(kb, (1,), minval=-bound, maxval=bound,
                              dtype=jnp.float32)

    out = prob_head(x, weight, bias)
    out = jax.block_until_ready(out)

    # Reference check in plain JAX (same math as the PyTorch forward)
    pooled_ref = jnp.mean(x, axis=(2, 3))                       # (B, C)
    ref = jax.nn.sigmoid(pooled_ref @ weight.T + bias)          # (B, 1)
    assert out.shape == (B, 1)
    assert jnp.allclose(out, ref, atol=1e-5, rtol=1e-5), "mismatch vs reference"

    print("KERNEL_OK")
</pallas_src>

<mosaic_0001>
module attributes {stable_mosaic.version = 11 : i64} {
  func.func @probhead_kernel(%arg0: i32, %arg1: i32, %arg2: memref<2x4x256xf32, #tpu.memory_space<vmem>>, %arg3: memref<1x4xf32, #tpu.memory_space<vmem>>, %arg4: memref<1xf32, #tpu.memory_space<smem>>, %arg5: memref<2x1xf32, #tpu.memory_space<vmem>>, %arg6: memref<2x4xf32, #tpu.memory_space<vmem>>) attributes {dimension_semantics = [#tpu.dimension_semantics<parallel>, #tpu.dimension_semantics<arbitrary>], iteration_bounds = array<i64: 1, 1>, scalar_prefetch = 0 : i64, scratch_operands = 1 : i64, tpu.core_type = #tpu.core_type<tc>, window_params = [{transform_indices = @transform_0, window_bounds = array<i64: 2, 4, 256>}, {pipeline_mode = #tpu.pipeline_mode<synchronous>, transform_indices = @transform_1, window_bounds = array<i64: 1, 4>}, {transform_indices = @transform_2, window_bounds = array<i64: 1>}, {transform_indices = @transform_3, window_bounds = array<i64: 2, 1>}]} {
    %c0_i32 = arith.constant 0 : i32
    %0 = arith.cmpi eq, %arg1, %c0_i32 : i32
    %1 = arith.extui %0 : i1 to i32
    %c0_i32_0 = arith.constant 0 : i32
    %2 = arith.cmpi ne, %1, %c0_i32_0 : i32
    scf.if %2 {
      %cst_9 = arith.constant 0.000000e+00 : f32
      %11 = vector.broadcast %cst_9 : f32 to vector<2x4xf32>
      %c0_10 = arith.constant 0 : index
      %c0_11 = arith.constant 0 : index
      %12 = vector.load %arg6[%c0_10, %c0_11] : memref<2x4xf32, #tpu.memory_space<vmem>>, vector<2x4xf32>
      tpu.vector_store %arg6[%c0_10, %c0_11], %11 {strides = array<i32>} : memref<2x4xf32, #tpu.memory_space<vmem>>, vector<2x4xf32>,
    } else {
    }
    %c0 = arith.constant 0 : index
    %c0_1 = arith.constant 0 : index
    %3 = vector.load %arg6[%c0, %c0_1] : memref<2x4xf32, #tpu.memory_space<vmem>>, vector<2x4xf32>
    %c0_2 = arith.constant 0 : index
    %c0_3 = arith.constant 0 : index
    %c0_4 = arith.constant 0 : index
    %4 = vector.load %arg2[%c0_2, %c0_3, %c0_4] : memref<2x4x256xf32, #tpu.memory_space<vmem>>, vector<2x4x256xf32>
    %cst = arith.constant dense<0.000000e+00> : vector<2x4xf32>
    %5 = vector.multi_reduction <add>, %4, %cst [2] : vector<2x4x256xf32> to vector<2x4xf32>
    %6 = arith.addf %3, %5 : vector<2x4xf32>
    %c0_5 = arith.constant 0 : index
    %c0_6 = arith.constant 0 : index
    %7 = vector.load %arg6[%c0_5, %c0_6] : memref<2x4xf32, #tpu.memory_space<vmem>>, vector<2x4xf32>
    tpu.vector_store %arg6[%c0_5, %c0_6], %6 {strides = array<i32>} : memref<2x4xf32, #tpu.memory_space<vmem>>, vector<2x4xf32>,
    %c0_i32_7 = arith.constant 0 : i32
    %8 = arith.cmpi eq, %arg1, %c0_i32_7 : i32
    %9 = arith.extui %8 : i1 to i32
    %c0_i32_8 = arith.constant 0 : i32
    %10 = arith.cmpi ne, %9, %c0_i32_8 : i32
    scf.if %10 {
      %c0_9 = arith.constant 0 : index
      %c0_10 = arith.constant 0 : index
      %11 = vector.load %arg6[%c0_9, %c0_10] : memref<2x4xf32, #tpu.memory_space<vmem>>, vector<2x4xf32>
      %c0_11 = arith.constant 0 : index
      %c0_12 = arith.constant 0 : index
      %12 = vector.load %arg3[%c0_11, %c0_12] : memref<1x4xf32, #tpu.memory_space<vmem>>, vector<1x4xf32>
      %13 = vector.broadcast %12 : vector<1x4xf32> to vector<2x4xf32>
      %14 = arith.mulf %11, %13 : vector<2x4xf32>
      %cst_13 = arith.constant dense<0.000000e+00> : vector<2xf32>
      %15 = vector.multi_reduction <add>, %14, %cst_13 [1] : vector<2x4xf32> to vector<2xf32>
      %16 = vector.shape_cast %15 : vector<2xf32> to vector<2x1xf32>
      %c0_14 = arith.constant 0 : index
      %17 = memref.load %arg4[%c0_14] : memref<1xf32, #tpu.memory_space<smem>>
      %18 = vector.broadcast %17 : f32 to vector<2x1xf32>
      %19 = arith.addf %16, %18 : vector<2x1xf32>
      %20 = arith.negf %19 : vector<2x1xf32>
      %21 = math.exp %20 : vector<2x1xf32>
      %cst_15 = arith.constant 1.000000e+00 : f32
      %22 = vector.broadcast %cst_15 : f32 to vector<2x1xf32>
      %23 = arith.addf %22, %21 : vector<2x1xf32>
      %24 = arith.divf %22, %23 : vector<2x1xf32>
      %c0_16 = arith.constant 0 : index
      %c0_17 = arith.constant 0 : index
      %25 = vector.load %arg5[%c0_16, %c0_17] : memref<2x1xf32, #tpu.memory_space<vmem>>, vector<2x1xf32>
      tpu.vector_store %arg5[%c0_16, %c0_17], %24 {strides = array<i32>} : memref<2x1xf32, #tpu.memory_space<vmem>>, vector<2x1xf32>,
    } else {
    }
    return
  }
  func.func @transform_0(%arg0: i32, %arg1: i32) -> (i32, i32, i32) {
    %c0_i32 = arith.constant 0 : i32
    %c0_i32_0 = arith.constant 0 : i32
    return %arg0, %c0_i32, %arg1 : i32, i32, i32
  }
  func.func @transform_1(%arg0: i32, %arg1: i32) -> (i32, i32) {
    %c0_i32 = arith.constant 0 : i32
    %c0_i32_0 = arith.constant 0 : i32
    %c0_i32_1 = arith.constant 0 : i32
    return %c0_i32, %c0_i32_0 : i32, i32
  }
  func.func @transform_2(%arg0: i32, %arg1: i32) -> i32 {
    %c0_i32 = arith.constant 0 : i32
    %c0_i32_0 = arith.constant 0 : i32
    return %c0_i32 : i32
  }
  func.func @transform_3(%arg0: i32, %arg1: i32) -> (i32, i32) {
    %c0_i32 = arith.constant 0 : i32
    %c0_i32_0 = arith.constant 0 : i32
    return %arg0, %c0_i32 : i32, i32
  }
}

</mosaic_0001>

<bundles_post_ra>
// kernel: tpu_custom_call.1
= control target key start
LH: loop header
LB: loop body
LE: loop exit
PB: predicated region body
PF: predicated region fallthrough
CT: control target
= control target key end

     0   :  { %9 = vsyncpa [#allocation5], 0  ;;  %s140_s12 = smov [#allocation4]   ;;  %s188_s0 = inlined_call_operand.hbm [shape: f32[2,4,256], index: 0, kind: input, shape index: {}]   ;;  %s189_s1 = inlined_call_operand.vmem [shape: f32[1,4], index: 1, kind: input, shape index: {}]   ;;  %s190_s2 = inlined_call_operand.<no memory space> [shape: f32[1], index: 2, kind: input, shape index: {}]   ;;  %s191_s3 = inlined_call_operand.vmem [shape: f32[2,1], index: 3, kind: output, shape index: {}]  }
   0x1   :  { %s15_s13 = sshll.u32 %s140_s12, 4  ;;  %s116_s16 = scalar_lea.hbm %s188_s0, 256  ;;  %s16_s13 = int_to_ptr.vmem [resolvable:$true] %s15_s13 }
   0x2   :  { %p117_p0 = scmp.ne.s32.totalorder %s188_s0, %s116_s16  ;;  %p120_p1 = scmp.lt.u32.totalorder %s116_s16, %s188_s0 }
   0x4   :  { %p122_p2 = pnand %p120_p1, %p117_p0 }
   0x6   :  { %125 = shalt.err (!%p122_p2)
}
   0x7   :  { %s126_s21 = scalar_lea.vmem %s16_s13, 256  ;;  %p131_p4 = scmp.lt.s32.totalorder %s16_s13, %s16_s13 }
   0x8   :  { %p127_p3 = scmp.ne.s32.totalorder %s16_s13, %s126_s21  ;;  %p132_p5 = scmp.lt.s32.totalorder %s126_s21, %s126_s21 }
   0xa   :  { %p133_p6 = por %p132_p5, %p131_p4 }
   0xc   :  { %p134_p7 = pnand %p133_p6, %p127_p3 }
   0xe   :  { %137 = shalt.err (!%p134_p7)
}
   0xf   :  { %s141_s22 = smov 128   ;;  %s142_s23 = smov 8  }
  0x10   :  { %21 = dma.hbm_to_vmem [thread:$0]  %s188_s0, 256, %s16_s13, [#allocation5], %s141_s22, %s141_s22, %s142_s23  }
  0x11   :  { %138 = dma.done.wait [#allocation5], 256  }
  0x12   :  { %139 = vsyncadd [#allocation5], 4294967040  ;;  %vm44_vm0 = vcmask 1043456   ;;  %v36_v0 = vld [vmem:[#allocation4] sm:$0xff]  ;;  %v37_v1 = vld [vmem:[#allocation4 + $0x8] sm:$0xff]  ;;  %vm33_vm1 = vcmask 25600   ;;  %v57_v11 = vlaneseq  ;;  %v89_v26 = vstv %s190_s2 }
  0x13   :  { %v40_v2 = vcombine.high %v36_v0, %v36_v0  ;;  %v45_v3 = vsel %vm44_vm0, %v36_v0, 0.0  ;;  %v41_v4 = vcombine.high %v37_v1, %v37_v1  ;;  %v50_v6 = vsel %vm44_vm0, %v37_v1, 0.0  ;;  %v104_v22 = vld [vmem:[%s189_s1] ss:$0 sm:$0xff] }
  0x14   :  { %v143_v10 = vmov 0.0   ;;  %v58_v12 = vand.u32 127, %v57_v11  ;;  %v60_v13 = vshrl.u32 %v57_v11, 7  ;;  %vm67_vm2 = vcmask 1041409  }
  0x15   :  { %v46_v5 = vsel %vm44_vm0, %v40_v2, 0.0  ;;  %v51_v7 = vsel %vm44_vm0, %v41_v4, 0.0  ;;  %34 = vst.msk [vmem:[#allocation2] sm:$0x3] %vm33_vm1, %v143_v10  ;;  %vm97_vm3 = vcmask 1024  }
  0x16   :  { %v47_v8 = vadd.f32 %v46_v5, %v45_v3  ;;  %v52_v9 = vadd.f32 %v51_v7, %v50_v6  ;;  %v61_v15 = vsub.s32 %v58_v12, %v60_v13 }
  0x18   :  { %48 = vadd.xlane.f32.xlu0 %v47_v8 }
  0x1c   :  { %53 = vadd.xlane.f32.xlu0 %v52_v9  ;;  %v35_v19 = vld [vmem:[#allocation2] sm:$0x3] }
  0xa5   :  { %v49_v14 = vpop.xlane.xlu0 %48 }
  0xa6   :  { %v62_v17 = vrot.slane %v49_v14, %v61_v15 }
  0xa9   :  { %v54_v16 = vpop.xlane.xlu0 %53 }
  0xaa   :  { %v66_v18 = vrot.slane %v54_v16, %v61_v15 }
  0xac   :  { %v68_v20 = vsel %vm67_vm2, %v66_v18, %v62_v17 }
  0xad   :  { %v70_v21 = vadd.f32 %v68_v20, %v35_v19 }
  0xaf   :  { %72 = vst.msk [vmem:[#allocation2] sm:$0x3] %vm33_vm1, %v70_v21 }
  0xb6   :  { %v76_v23 = vld [vmem:[#allocation2] sm:$0x3] }
  0xb7   :  { %v84_v24 = vmul.f32 %v104_v22, %v76_v23 }
  0xb9   :  { %v85_v25 = vsel %vm33_vm1, %v84_v24, 0.0 }
  0xba   :  { %86 = vadd.xlane.f32.xlu1 %v85_v25 }
 0x147   :  { %v87_v27 = vpop.xlane.xlu1 %86 }
 0x148   :  { %v90_v28 = vadd.f32 %v89_v26, %v87_v27 }
 0x14a   :  { %v105_v29 = vmul.f32 -1.442695, %v90_v28 }
 0x14c   :  { %112 = vpow2.f32 %v105_v29 }
 0x156   :  { %v113_v30 = vpop.eup %112 }
 0x157   :  { %v94_v31 = vadd.f32 1.0, %v113_v30 }
 0x159   :  { %114 = vrcp.f32 %v94_v31 }
 0x163   :  { %v115_v32 = vpop.eup %114 }
 0x164   :  { %98 = vst.msk [vmem:[%s191_s3] sm:$0x3] %vm97_vm3, %v115_v32 }
 0x165   :  { %103 = vsyncpa [#allocation5], 1 }

</bundles_post_ra>
